<compile_context>
chip_gen: v7x
topology: tpu7x:2x2x1
jax: 0.10.0
libtpu: 0.0.40
codegen_flags: <defaults>
</compile_context>

<pallas_src>
import functools

import jax
import jax.numpy as jnp
from jax.experimental import pallas as pl
from jax.experimental.pallas import tpu as pltpu

KSIZE = 7
PAD = KSIZE // 2


# ------------------------- tile / budget selection --------------------------
def _physical_vmem_bytes():
    try:
        v = getattr(pltpu.get_tpu_info(), "vmem_capacity_bytes", None)
        if v:
            return int(v)
    except Exception:
        pass
    return 64 * 1024 * 1024          # v7x-safe conservative default


def _largest_aligned_divisor(n, cap, align):
    for t in range(min(cap, n), 0, -1):
        if n % t == 0 and t % align == 0:
            return t
    return n


def _choose_tiles(C, S, itemsize, vmem_limit):
    # Channel tile for the gating pass: ragged last block is fine (write-masked).
    tc_apply = C if C <= 128 else 128
    # Channel tile for the reduction: must divide C exactly so no OOB channels
    # ever enter the running sum / max.
    tc_reduce = C if C <= 128 else _largest_aligned_divisor(C, 128, 8)

    # Lane-dense spatial tile, as large as the double-buffered working set
    # allows (shared by the reduce and gating passes).
    budget = int(vmem_limit * 0.55)
    per_apply = (4 * tc_apply + 2) * itemsize          # 2*(x)+2*(out)+2*(gate)
    per_reduce = 2 * tc_reduce * itemsize + 24         # 2*(x)+2*(2,ts f32)+scratch
    per_elem = max(per_apply, per_reduce)
    ts_cap = min(max(budget // per_elem, 512), 16384)
    if S <= ts_cap:
        ts = S                        # full-dim block: always a legal BlockSpec
    else:
        ts = (ts_cap // 512) * 512    # 128-aligned; ragged last block handled
    return tc_reduce, tc_apply, ts


# ------------- kernel 1: channel mean / max (lane-dense spatial tiles) ------
def _reduce_kernel(x_ref, am_ref, acc_ref, *, inv_c):
    # x_ref: (1, tCr, tS) ; am_ref: (1, 2, tS) f32 ; acc_ref: (2, tS) f32 scratch
    c = pl.program_id(2)
    x = x_ref[0].astype(jnp.float32)                  # (tCr, tS)
    psum = jnp.sum(x, axis=0, keepdims=True)          # (1, tS)
    pmax = jnp.max(x, axis=0, keepdims=True)          # (1, tS)

    @pl.when(c == 0)
    def _():
        acc_ref[...] = jnp.concatenate([psum, pmax], axis=0)

    @pl.when(c > 0)
    def _():
        prev = acc_ref[...]
        acc_ref[...] = jnp.concatenate(
            [prev[0:1] + psum, jnp.maximum(prev[1:2], pmax)], axis=0)

    @pl.when(c == pl.num_programs(2) - 1)
    def _():
        res = acc_ref[...]
        am_ref[0] = jnp.concatenate([res[0:1] * inv_c, res[1:2]], axis=0)


# ------ kernel 2: 7x7 conv (2->1 ch, padding pre-applied) + exact sigmoid ----
def _conv_gate_kernel(w_ref, am_ref, g_ref):
    # w_ref : (2*7*7,) SMEM flattened conv weight, [ch][ki][kj]
    # am_ref: (1, 2, Hp, Wp) VMEM padded avg/max map (resident per batch)
    # g_ref : (1, tH, W) VMEM one row-tile of the gate
    tH, W = g_ref.shape[1], g_ref.shape[2]
    row0 = pl.program_id(1) * tH
    if tH % 8 == 0:
        row0 = pl.multiple_of(row0, 8)

    acc = jnp.zeros((tH, W), jnp.float32)
    for ch in range(2):
        p = am_ref[0, ch, pl.ds(row0, tH + 2 * PAD), :]       # (tH+6, Wp)
        # Lane-offset (dj) slice hoisted out of the sublane (di) loop:
        # 14 XLU lane shifts per tile instead of 98.
        for dj in range(KSIZE):
            p_dj = p[:, dj:dj + W]                            # (tH+6, W)
            for di in range(KSIZE):
                w = w_ref[ch * KSIZE * KSIZE + di * KSIZE + dj]   # SMEM scalar
                acc = acc + w * p_dj[di:di + tH, :]

    g_ref[0] = jax.nn.sigmoid(acc)     # exact sigmoid: conv pass is tiny


# --------------- kernel 3: out = gate * x (lane-dense, tiled B/S/C) ----------
def _apply_gate_kernel(g_ref, x_ref, o_ref):
    # g_ref: (1, 1, tS) ; x_ref / o_ref: (1, tC, tS)
    o_ref[...] = (g_ref[...] * x_ref[...]).astype(o_ref.dtype)


def spatial_attention(x, conv_w):
    """x: (B, C, H, W).  conv_w: (1, 2, 7, 7) (PyTorch OIHW, bias=False)."""
    B, C, H, W = x.shape
    S = H * W
    itemsize = jnp.dtype(x.dtype).itemsize

    # Generation-aware scoped-VMEM budget (96 MiB on v5e/v6e, 48 MiB on v7x).
    vmem_limit = min(96 * 1024 * 1024, int(_physical_vmem_bytes() * 0.75))
    vmem_limit = max(vmem_limit, 32 * 1024 * 1024)
    tc_r, tc_a, ts = _choose_tiles(C, S, itemsize, vmem_limit)

    w_flat = conv_w.reshape(-1).astype(jnp.float32)           # (98,)
    x_flat = x.reshape(B, C, S)                               # free reshape

    n_s = pl.cdiv(S, ts)
    n_cr = C // tc_r
    n_ca = pl.cdiv(C, tc_a)

    # --- 1) channel mean / max, channel axis as inner reduction -------------
    avgmax = pl.pallas_call(
        functools.partial(_reduce_kernel, inv_c=1.0 / C),
        out_shape=jax.ShapeDtypeStruct((B, 2, S), jnp.float32),
        grid_spec=pltpu.PrefetchScalarGridSpec(
            num_scalar_prefetch=0,
            grid=(B, n_s, n_cr),
            in_specs=[pl.BlockSpec((1, tc_r, ts), lambda b, s, c: (b, c, s))],
            out_specs=pl.BlockSpec((1, 2, ts), lambda b, s, c: (b, 0, s)),
            scratch_shapes=[pltpu.VMEM((2, ts), jnp.float32)]),
        compiler_params=pltpu.CompilerParams(
            dimension_semantics=("parallel", "parallel", "arbitrary"),
            vmem_limit_bytes=vmem_limit),
    )(x_flat)

    # --- 2) 7x7 conv + sigmoid -> gate, tiled over output rows --------------
    th = H if H <= 32 else 32
    n_h = pl.cdiv(H, th)
    hp = n_h * th + 2 * PAD            # padded rows cover ragged last row tile
    wp = W + 2 * PAD
    am_pad = jnp.pad(avgmax.reshape(B, 2, H, W),
                     ((0, 0), (0, 0), (PAD, hp - PAD - H), (PAD, PAD)))

    gate = pl.pallas_call(
        _conv_gate_kernel,
        out_shape=jax.ShapeDtypeStruct((B, H, W), jnp.float32),
        grid_spec=pltpu.PrefetchScalarGridSpec(
            num_scalar_prefetch=0,
            grid=(B, n_h),
            in_specs=[
                pl.BlockSpec(memory_space=pltpu.MemorySpace.SMEM),     # weights
                pl.BlockSpec((1, 2, hp, wp), lambda b, h: (b, 0, 0, 0)),
            ],
            out_specs=pl.BlockSpec((1, th, W), lambda b, h: (b, h, 0)),
        ),
        compiler_params=pltpu.CompilerParams(
            dimension_semantics=("parallel", "parallel"),
            vmem_limit_bytes=vmem_limit),
    )(w_flat, am_pad)

    # --- 3) out = gate * x; channel innermost so the gate tile is fetched ----
    #        once per (batch, spatial tile) -----------------------------------
    gate_flat = gate.reshape(B, 1, S)                          # free reshape
    out_flat = pl.pallas_call(
        _apply_gate_kernel,
        out_shape=jax.ShapeDtypeStruct((B, C, S), x.dtype),
        grid_spec=pltpu.PrefetchScalarGridSpec(
            num_scalar_prefetch=0,
            grid=(B, n_s, n_ca),
            in_specs=[
                pl.BlockSpec((1, 1, ts), lambda b, s, c: (b, 0, s)),     # gate
                pl.BlockSpec((1, tc_a, ts), lambda b, s, c: (b, c, s)),  # x
            ],
            out_specs=pl.BlockSpec((1, tc_a, ts), lambda b, s, c: (b, c, s)),
        ),
        compiler_params=pltpu.CompilerParams(
            dimension_semantics=("parallel", "parallel", "parallel"),
            vmem_limit_bytes=vmem_limit),
    )(gate_flat, x_flat)

    return out_flat.reshape(B, C, H, W)


def spatial_attention_ref(x, conv_w):
    """Pure-JAX reference (mirrors the PyTorch forward)."""
    avg_out = jnp.mean(x, axis=1, keepdims=True)
    max_out = jnp.max(x, axis=1, keepdims=True)
    x1 = jnp.concatenate([avg_out, max_out], axis=1)
    y = jax.lax.conv_general_dilated(
        x1, conv_w, window_strides=(1, 1),
        padding=((PAD, PAD), (PAD, PAD)),
        dimension_numbers=("NCHW", "OIHW", "NCHW"))
    return jax.nn.sigmoid(y) * x


if __name__ == "__main__":
    key = jax.random.PRNGKey(0)
    kx, kw = jax.random.split(key)

    B, C, H, W = 2, 4, 16, 16
    x = jax.random.normal(kx, (B, C, H, W), dtype=jnp.float32)
    # Deterministic synthetic conv weight, PyTorch nn.Conv2d(2,1,7) shape (1,2,7,7).
    conv_w = (jax.random.normal(kw, (1, 2, KSIZE, KSIZE), dtype=jnp.float32)
              * (1.0 / (2 * KSIZE * KSIZE) ** 0.5))

    out = jax.block_until_ready(spatial_attention(x, conv_w))
    ref = spatial_attention_ref(x, conv_w)

    assert out.shape == (B, C, H, W)
    err = float(jnp.max(jnp.abs(out - ref)))
    assert err < 1e-4, f"mismatch vs reference: {err}"
    print("KERNEL_OK")
</pallas_src>

<mosaic_0001>
module attributes {stable_mosaic.version = 11 : i64} {
  func.func @_reduce_kernel(%arg0: i32, %arg1: i32, %arg2: i32, %arg3: memref<1x4x256xf32, #tpu.memory_space<vmem>>, %arg4: memref<1x2x256xf32, #tpu.memory_space<vmem>>, %arg5: memref<2x256xf32, #tpu.memory_space<vmem>>) attributes {dimension_semantics = [#tpu.dimension_semantics<parallel>, #tpu.dimension_semantics<parallel>, #tpu.dimension_semantics<arbitrary>], iteration_bounds = array<i64: 2, 1, 1>, scalar_prefetch = 0 : i64, scratch_operands = 1 : i64, tpu.core_type = #tpu.core_type<tc>, window_params = [{transform_indices = @transform_0, window_bounds = array<i64: 1, 4, 256>}, {transform_indices = @transform_1, window_bounds = array<i64: 1, 2, 256>}]} {
    %c0 = arith.constant 0 : index
    %c0_0 = arith.constant 0 : index
    %c0_1 = arith.constant 0 : index
    %0 = vector.load %arg3[%c0, %c0_0, %c0_1] : memref<1x4x256xf32, #tpu.memory_space<vmem>>, vector<1x4x256xf32>
    %1 = vector.shape_cast %0 : vector<1x4x256xf32> to vector<4x256xf32>
    %cst = arith.constant dense<0.000000e+00> : vector<256xf32>
    %2 = vector.multi_reduction <add>, %1, %cst [0] : vector<4x256xf32> to vector<256xf32>
    %3 = vector.shape_cast %2 : vector<256xf32> to vector<1x256xf32>
    %cst_2 = arith.constant dense<0xFF800000> : vector<256xf32>
    %4 = vector.multi_reduction <maximumf>, %1, %cst_2 [0] : vector<4x256xf32> to vector<256xf32>
    %5 = vector.shape_cast %4 : vector<256xf32> to vector<1x256xf32>
    %c0_i32 = arith.constant 0 : i32
    %6 = arith.cmpi eq, %arg2, %c0_i32 : i32
    %7 = arith.extui %6 : i1 to i32
    %c0_i32_3 = arith.constant 0 : i32
    %8 = arith.cmpi ne, %7, %c0_i32_3 : i32
    scf.if %8 {
      %15 = tpu.concatenate %3, %5 in 0 : vector<1x256xf32>, vector<1x256xf32> -> vector<2x256xf32>
      %c0_8 = arith.constant 0 : index
      %c0_9 = arith.constant 0 : index
      %16 = vector.load %arg5[%c0_8, %c0_9] : memref<2x256xf32, #tpu.memory_space<vmem>>, vector<2x256xf32>
      tpu.vector_store %arg5[%c0_8, %c0_9], %15 {strides = array<i32>} : memref<2x256xf32, #tpu.memory_space<vmem>>, vector<2x256xf32>,
    } else {
    }
    %c0_i32_4 = arith.constant 0 : i32
    %9 = arith.cmpi sgt, %arg2, %c0_i32_4 : i32
    %10 = arith.extui %9 : i1 to i32
    %c0_i32_5 = arith.constant 0 : i32
    %11 = arith.cmpi ne, %10, %c0_i32_5 : i32
    scf.if %11 {
      %c0_8 = arith.constant 0 : index
      %c0_9 = arith.constant 0 : index
      %15 = vector.load %arg5[%c0_8, %c0_9] : memref<2x256xf32, #tpu.memory_space<vmem>>, vector<2x256xf32>
      %16 = vector.extract_strided_slice %15 {offsets = [0, 0], sizes = [1, 256], strides = [1, 1]} : vector<2x256xf32> to vector<1x256xf32>
      %17 = arith.addf %16, %3 : vector<1x256xf32>
      %18 = vector.extract_strided_slice %15 {offsets = [1, 0], sizes = [1, 256], strides = [1, 1]} : vector<2x256xf32> to vector<1x256xf32>
      %19 = arith.maximumf %18, %5 : vector<1x256xf32>
      %20 = tpu.concatenate %17, %19 in 0 : vector<1x256xf32>, vector<1x256xf32> -> vector<2x256xf32>
      %c0_10 = arith.constant 0 : index
      %c0_11 = arith.constant 0 : index
      %21 = vector.load %arg5[%c0_10, %c0_11] : memref<2x256xf32, #tpu.memory_space<vmem>>, vector<2x256xf32>
      tpu.vector_store %arg5[%c0_10, %c0_11], %20 {strides = array<i32>} : memref<2x256xf32, #tpu.memory_space<vmem>>, vector<2x256xf32>,
    } else {
    }
    %c0_i32_6 = arith.constant 0 : i32
    %12 = arith.cmpi eq, %arg2, %c0_i32_6 : i32
    %13 = arith.extui %12 : i1 to i32
    %c0_i32_7 = arith.constant 0 : i32
    %14 = arith.cmpi ne, %13, %c0_i32_7 : i32
    scf.if %14 {
      %c0_8 = arith.constant 0 : index
      %c0_9 = arith.constant 0 : index
      %15 = vector.load %arg5[%c0_8, %c0_9] : memref<2x256xf32, #tpu.memory_space<vmem>>, vector<2x256xf32>
      %16 = vector.extract_strided_slice %15 {offsets = [0, 0], sizes = [1, 256], strides = [1, 1]} : vector<2x256xf32> to vector<1x256xf32>
      %cst_10 = arith.constant 2.500000e-01 : f32
      %17 = vector.broadcast %cst_10 : f32 to vector<1x256xf32>
      %18 = arith.mulf %16, %17 : vector<1x256xf32>
      %19 = vector.extract_strided_slice %15 {offsets = [1, 0], sizes = [1, 256], strides = [1, 1]} : vector<2x256xf32> to vector<1x256xf32>
      %20 = tpu.concatenate %18, %19 in 0 : vector<1x256xf32>, vector<1x256xf32> -> vector<2x256xf32>
      %c0_11 = arith.constant 0 : index
      %c0_12 = arith.constant 0 : index
      %c0_13 = arith.constant 0 : index
      %21 = vector.load %arg4[%c0_11, %c0_12, %c0_13] : memref<1x2x256xf32, #tpu.memory_space<vmem>>, vector<1x2x256xf32>
      %22 = vector.shape_cast %21 : vector<1x2x256xf32> to vector<2x256xf32>
      %23 = vector.shape_cast %20 : vector<2x256xf32> to vector<1x2x256xf32>
      tpu.vector_store %arg4[%c0_11, %c0_12, %c0_13], %23 {strides = array<i32>} : memref<1x2x256xf32, #tpu.memory_space<vmem>>, vector<1x2x256xf32>,
    } else {
    }
    return
  }
  func.func @transform_0(%arg0: i32, %arg1: i32, %arg2: i32) -> (i32, i32, i32) {
    %c0_i32 = arith.constant 0 : i32
    return %arg0, %arg2, %arg1 : i32, i32, i32
  }
  func.func @transform_1(%arg0: i32, %arg1: i32, %arg2: i32) -> (i32, i32, i32) {
    %c0_i32 = arith.constant 0 : i32
    %c0_i32_0 = arith.constant 0 : i32
    return %arg0, %c0_i32, %arg1 : i32, i32, i32
  }
}

</mosaic_0001>

<bundles_post_ra>
// kernel: tpu_custom_call.1
= control target key start
LH: loop header
LB: loop body
LE: loop exit
PB: predicated region body
PF: predicated region fallthrough
CT: control target
= control target key end

     0   :  { %6 = vsyncpa [#allocation4], 0  ;;  %s817_s0 = inlined_call_operand.hbm [shape: f32[2,4,256], index: 0, kind: input, shape index: {}]   ;;  %s818_s1 = inlined_call_operand.hbm [shape: f32[2,2,256], index: 1, kind: output, shape index: {}]  }
   0x1   :  { %8 = vsyncpa [#allocation4 + $0x1], 0 }
   0x2   :  { %9 = vsyncpa [#allocation5], 0 }
   0x3   :  { %11 = vsyncpa [#allocation5 + $0x1], 0  ;;  %s640_s6 = smov 0   ;;  %s642_s7 = smov 0  }
   0x4   :  { %s644_s8 = smov 0   ;;  %s646_s9 = smov 0  }
   0x5   :  { %s648_s10 = smov 0   ;;  %s650_s11 = smov 0  }
   0x6 LB: > { %s431_s12 = sadd.s32 4294967295, %s626_s11   ;;  %s432_s13 = sadd.s32 4294967294, %s626_s11   ;;  %s626_s11 = sphi %s650_s11, %s17_s11   ;;  %s622_s10 = sphi %s648_s10, %s834_s10   ;;  %s618_s9 = sphi %s646_s9, %s833_s9   ;;  %s614_s8 = sphi %s644_s8, %s832_s8   ;;  %s610_s7 = sphi %s642_s7, %s831_s7   ;;  %s606_s6 = sphi %s640_s6, %s830_s6  }
   0x7   : > { %s36_s14 = sadd.s32 1, %s622_s10  ;;  %s47_s15 = sadd.s32 1, %s614_s8 }
   0x8   : > { %p38_p0 = scmp.ge.s32.totalorder %s36_s14, 2  ;;  %p54_p1 = scmp.ne.s32.totalorder %s614_s8, %s610_s7 }
   0x9   : > { %p55_p2 = scmp.eq.s32.totalorder %s626_s11, 0  ;;  %p60_p3 = scmp.ne.s32.totalorder %s610_s7, %s606_s6 }
   0xa   : > { %s836_s14 = smov (%p38_p0, %s36_s14), 0  ;;  %p61_p5 = scmp.eq.s32.totalorder %s431_s12, 0 }
   0xb   : > { %p681_p4 = por %p55_p2, %p54_p1  ;;  %s40_s17 = ssub.s32 %s622_s10, %s836_s14 }
   0xc   : > { %p86_p6 = scmp.eq.s32.totalorder %s431_s12, 1  ;;  %p45_p7 = scmp.eq.s32.totalorder %s40_s17, 0 }
   0xd   : > { %p687_p8 = por %p61_p5, %p60_p3  ;;  %p92_p10 = scmp.eq.s32.totalorder %s432_s13, 1 }
   0xe   : > { %p691_p9 = por %p86_p6, %p54_p1  ;;  %p463_p13 = scmp.lt.s32.totalorder %s626_s11, 2 }
   0xf   : > { %s696_s20 = scalar_select %p45_p7, %s614_s8, %s47_s15  }
  0x10   : > { %s822_s19 = scalar_select %p691_p9, 1, 0 }
  0x11   : > { %p698_p11 = por %p92_p10, %p60_p3  ;;  %s112_s22 = sand.u32 1, %s614_s8  }
  0x12   : > { %s435_s23 = sshll.u32 %s112_s22, 3  ;;  %s449_s24 = sshll.u32 %s622_s10, 7 }
  0x13   : > { %s823_s21 = scalar_select %p698_p11, 1, 0 }
  0x14   : > { %s709_s27 = scalar_lea.hbm %s817_s0, %s449_s24  ;;  %s116_s28 = scalar_lea.vmem [#allocation3], %s435_s23 }
  0x15   : > { %s128_s29 = sshll.u32 %s116_s28, 4  ;;  %p715_p0 = pnand %p463_p13, %p681_p4  ;;  %s711_s29 = int_to_ptr.vmem [resolvable:$true] %s128_s29 }
  0x16   : > { %s113_s2 = scalar_lea.sflag [#allocation4], %s112_s22  ;;  %s514_s3 = scalar_lea.hbm %s709_s27, 128 }
  0x17   : > { %p515_p3 = scmp.ne.s32.totalorder %s709_s27, %s514_s3  ;;  %p516_p5 = pneg %p715_p0 }
  0x18   : > { %s519_s12 = scalar_lea.hbm %s817_s0, 256  ;;  %p520_p4 = scmp.lt.u32.totalorder %s709_s27, %s817_s0 }
  0x19   : > { %p517_p6 = pnand %p516_p5, %p515_p3  ;;  %p521_p10 = scmp.lt.u32.totalorder %s519_s12, %s514_s3 }
  0x1a   : > { %p523_p12 = scmp.lt.u32.totalorder %s514_s3, %s709_s27 }
  0x1b   : > { %p518_p7 = pneg %p517_p6  ;;  %p522_p13 = por %p521_p10, %p520_p4 }
  0x1d   : > { %p524_p1 = por %p523_p12, %p522_p13 }
  0x1f   : > { %p525_p2 = pnand %p524_p1, %p518_p7 }
  0x21   : > { %528 = shalt.err (!%p525_p2)
}
  0x22   : > { %s529_s16 = scalar_lea.vmem %s711_s29, 128  ;;  %s628_s17 = smov [#allocation3]  }
  0x23   : > { %p530_p3 = scmp.ne.s32.totalorder %s711_s29, %s529_s16  ;;  %s534_s22 = sshll.u32 %s628_s17, 4  ;;  %s535_s22 = int_to_ptr.vmem [resolvable:$false] %s534_s22 }
  0x24   : > { %s536_s23 = scalar_lea.vmem %s535_s22, 256  ;;  %p537_p9 = scmp.lt.s32.totalorder %s711_s29, %s535_s22 }
  0x25   : > { %p532_p6 = pnand %p530_p3, %p516_p5  ;;  %p538_p4 = scmp.lt.s32.totalorder %s536_s23, %s529_s16 }
  0x27   : > { %p533_p11 = pneg %p532_p6  ;;  %p539_p10 = por %p538_p4, %p537_p9 }
  0x29   : > { %p540_p12 = pnand %p539_p10, %p533_p11 }
  0x2b   : > { %543 = shalt.err (!%p540_p12)
}
  0x2c   : > { %458 = dma.hbm_to_vmem [thread:$0]  (!%p715_p0), %s709_s27, 128, %s711_s29, %s113_s2  }
  0x2d   : > { %p825_p1 = scmp.lt.s32.totalorder %s626_s11, 3  ;;  %p826_p2 = scmp.ge.s32.totalorder %s626_s11, 1 }
  0x2f   : > { %p134_p5 = pnand %p826_p2, %p825_p1 }
  0x30   : > { %s751_s24 = sand.u32 (!%p134_p5), 1, %s610_s7  }
  0x31   : > { %137 = sbr.rel (%p134_p5) target bundleno = 105 (0x69), region = 24  ;;  %s439_s25 = sshll.u32 (!%p134_p5), %s751_s24, 3 }
  0x32   : > { %s140_s26 = scalar_lea.sflag (!%p134_p5), [#allocation4], %s751_s24  ;;  %s143_s28 = scalar_lea.vmem (!%p134_p5), [#allocation3], %s439_s25 }
  0x38   : > { %597 = dma.done.wait (%p687_p8), %s140_s26, 128  }
  0x39   : > { %599 = vsyncadd (%p687_p8), %s140_s26, 4294967168  ;;  %vm168_vm0 = vcmask 1043456   ;;  %v164_v0 = vld [vmem:[%s143_s28] sm:$0xff]  ;;  %vm201_vm1 = vcmask 1040384   ;;  %v289_v33 = vlaneseq  ;;  %s440_s18 = sshll.u32 %s751_s24, 2  ;;  %s450_s30 = sshll.u32 %s618_s9, 6 }
  0x3a   : > { %v166_v1 = vcombine.high %v164_v0, %v164_v0  ;;  %v169_v2 = vsel %vm168_vm0, %v164_v0, 0.0  ;;  %v183_v3 = vsel %vm168_vm0, %v164_v0, -inf  ;;  %s161_s27 = scalar_lea.vmem [#allocation6], %s440_s18  ;;  %s770_s4 = scalar_lea.hbm %s818_s1, %s450_s30 }
  0x3b   : > { %v170_v4 = vrot.slane %v169_v2, 4  ;;  %v184_v5 = vrot.slane %v183_v3, 4  ;;  %v290_v34 = vshrl.u32 %v289_v33, 7  ;;  %s342_s29 = sshll.u32 %s161_s27, 4  ;;  %s326_s5 = scalar_lea.sflag [#allocation5], %s751_s24  ;;  %s765_s29 = int_to_ptr.vmem [resolvable:$true] %s342_s29 }
  0x3c   : > { %v176_v6 = vsel %vm168_vm0, %v166_v1, 0.0  ;;  %v190_v7 = vsel %vm168_vm0, %v166_v1, -inf  ;;  %s544_s12 = scalar_lea.vmem %s765_s29, 64  ;;  %p827_p9 = scmp.ne.s32.totalorder %s822_s19, 0 }
  0x3d   : > { %v171_v8 = vadd.f32 %v170_v4, %v169_v2  ;;  %v177_v9 = vrot.slane %v176_v6, 4  ;;  %v185_v10 = vmax.f32 %v183_v3, %v184_v5  ;;  %v191_v11 = vrot.slane %v190_v7, 4  ;;  %p545_p8 = scmp.ne.s32.totalorder %s765_s29, %s544_s12  ;;  %s629_s9 = smov [#allocation6]  }
  0x3e   : > { %v291_v35 = vsub.s32 0, %v290_v34  ;;  %v295_v36 = vsub.s32 2, %v290_v34  ;;  %v302_v37 = vsub.s32 1, %v290_v34  ;;  %v306_v38 = vsub.s32 3, %v290_v34  ;;  %s548_s13 = sshll.u32 %s629_s9, 4  ;;  %s549_s13 = int_to_ptr.vmem [resolvable:$false] %s548_s13 }
  0x3f   : > { %v172_v12 = vrot.slane %v171_v8, 2  ;;  %v178_v13 = vadd.f32 %v177_v9, %v176_v6  ;;  %v186_v14 = vrot.slane %v185_v10, 2  ;;  %v192_v15 = vmax.f32 %v190_v7, %v191_v11  ;;  %p546_p11 = pnand %p545_p8, %p827_p9  ;;  %s550_s15 = scalar_lea.vmem %s549_s13, 128 }
  0x40   : > { %p551_p7 = scmp.lt.s32.totalorder %s765_s29, %s549_s13  ;;  %p552_p13 = scmp.lt.s32.totalorder %s550_s15, %s544_s12 }
  0x41   : > { %v173_v16 = vadd.f32 %v172_v12, %v171_v8  ;;  %v179_v17 = vrot.slane %v178_v13, 2  ;;  %v187_v18 = vmax.f32 %v185_v10, %v186_v14  ;;  %v193_v19 = vrot.slane %v192_v15, 2  ;;  %p547_p0 = pneg %p546_p11 }
  0x42   : > { %p553_p3 = por %p552_p13, %p551_p7 }
  0x43   : > { %v174_v20 = vrot.slane %v173_v16, 1  ;;  %v180_v21 = vadd.f32 %v179_v17, %v178_v13  ;;  %v188_v22 = vrot.slane %v187_v18, 1  ;;  %v194_v23 = vmax.f32 %v192_v15, %v193_v19 }
  0x44   : > { %p554_p6 = pnand %p553_p3, %p547_p0 }
  0x45   : > { %v175_v24 = vadd.f32 %v174_v20, %v173_v16  ;;  %v181_v25 = vrot.slane %v180_v21, 1  ;;  %v189_v26 = vmax.f32 %v187_v18, %v188_v22  ;;  %v195_v27 = vrot.slane %v194_v23, 1 }
  0x47   : > { %v182_v28 = vadd.f32 %v181_v25, %v180_v21  ;;  %v196_v29 = vmax.f32 %v194_v23, %v195_v27  ;;  %v202_v30 = vsel %vm201_vm1, %v175_v24, %v189_v26 }
  0x49   : > { %v203_v31 = vsel %vm201_vm1, %v182_v28, %v196_v29 }
  0x4a   : > { %v206_v32 = vcombine.low %v202_v30, %v203_v31 }
  0x4c   : > { %441 = vst.sshfl [vmem:[#allocation2] sm:$0x33 pattern:$0x76325410] %v206_v32 }
  0x53   : > { %v286_v39 = vld [vmem:[#allocation2] sm:$0xf] }
  0x54   : > { %v287_v40 = vmul.f32 0.25, %v286_v39  ;;  %v303_v43 = vrot.slane %v286_v39, %v302_v37  ;;  %v307_v44 = vrot.slane %v286_v39, %v306_v38 }
  0x56   : > { %v292_v41 = vrot.slane %v287_v40, %v291_v35  ;;  %v296_v42 = vrot.slane %v287_v40, %v295_v36 }
  0x58   : > { %v311_v45 = vsel %vm201_vm1, %v292_v41, %v303_v43  ;;  %v312_v46 = vsel %vm201_vm1, %v296_v42, %v307_v44 }
  0x59   : > { %v315_v47 = vcombine.low %v311_v45, %v312_v46 }
  0x5b   : > { %443 = vst.sshfl [vmem:[%s161_s27] sm:$0x33 pattern:$0x76325410] %v315_v47 }
  0x5c   : > { %557 = shalt.err (!%p554_p6)
}
  0x5d   : > { %s558_s16 = scalar_lea.hbm %s770_s4, 64  ;;  %s562_s23 = scalar_lea.hbm %s818_s1, 128 }
  0x5e   : > { %p559_p4 = scmp.ne.s32.totalorder %s770_s4, %s558_s16  ;;  %p563_p1 = scmp.lt.u32.totalorder %s770_s4, %s818_s1 }
  0x5f   : > { %p564_p2 = scmp.lt.u32.totalorder %s562_s23, %s558_s16  ;;  %p566_p8 = scmp.lt.u32.totalorder %s558_s16, %s770_s4 }
  0x60   : > { %p560_p10 = pnand %p559_p4, %p827_p9 }
  0x61   : > { %p565_p5 = por %p564_p2, %p563_p1 }
  0x62   : > { %p561_p12 = pneg %p560_p10 }
  0x63   : > { %p567_p11 = por %p566_p8, %p565_p5 }
  0x65   : > { %p568_p0 = pnand %p567_p11, %p561_p12 }
  0x67   : > { %571 = shalt.err (!%p568_p0)
}
  0x68   : > { %453 = dma.vmem_to_hbm [thread:$0]  (%p827_p9), %s765_s29, 64, %s770_s4, %s326_s5  }
  0x69 PF: > { %s354_s26 = sand.u32 1, %s606_s6   ;;  %p828_p7 = scmp.ne.s32.totalorder %s823_s21, 0 }
  0x6a   : > { %p829_p13 = scmp.ge.s32.totalorder %s626_s11, 2  ;;  %s355_s28 = scalar_lea.sflag [#allocation5], %s354_s26 }
  0x6c   : > { %p460_p3 = pnand %p829_p13, %p828_p7 }
  0x6e   : > { %601 = dma.done.wait (!%p460_p3), %s355_s28, 64  }
  0x6f   : > { %603 = vsyncadd (!%p460_p3), %s355_s28, 4294967232  ;;  %s17_s11 = sadd.s32 1, %s626_s11   ;;  %s830_s6 = smov %s610_s7 }
  0x70   : > { %p14_p6 = scmp.ge.s32.totalorder %s17_s11, 4   ;;  %s831_s7 = smov %s614_s8 }
  0x71   : > { %s832_s8 = smov %s696_s20  ;;  %s833_s9 = smov %s622_s10 }
  0x72   : > { %s834_s10 = smov %s836_s14  ;;  %16 = sbr.rel (!%p14_p6) target bundleno = 6 (0x6), region = 81 }
  0x79   :  { %360 = vsyncpa [#allocation4], 1 }
  0x7a   :  { %362 = vsyncpa [#allocation4 + $0x1], 1 }
  0x7b   :  { %363 = vsyncpa [#allocation5], 1 }
  0x7c   :  { %365 = vsyncpa [#allocation5 + $0x1], 1 }

</bundles_post_ra>
